<compile_context>
chip_gen: v7x
topology: tpu7x:2x2x1
jax: 0.10.0
libtpu: 0.0.40
codegen_flags: <defaults>
</compile_context>

<pallas_src>
import functools

import jax
import jax.numpy as jnp
from jax.experimental import pallas as pl
from jax.experimental.pallas import tpu as pltpu

LANE = 128      # TPU lane width (hidden dim padded to this)
SUBLANE = 8     # f32 sublane granularity (batch tiling unit)


def _round_up(x, m):
    return ((x + m - 1) // m) * m


def brain_kernel(x_ref, w1_ref, b1_ref, w2_ref, b2_ref, w3_ref, b3_ref, o_ref):
    """Fused l3(relu(l2(relu(l1(x))))) for one (tm, in_size) activation tile."""
    cdt = w1_ref.dtype                         # compute dtype (f32 or bf16)
    x = x_ref[...].astype(cdt)                 # cast in-kernel: no extra HBM pass
    h1 = jnp.dot(x, w1_ref[...], preferred_element_type=jnp.float32) + b1_ref[...]
    h1 = jnp.maximum(h1, 0.0)                  # relu(l1(x))
    h2 = jnp.dot(h1.astype(cdt), w2_ref[...],
                 preferred_element_type=jnp.float32) + b2_ref[...]
    h2 = jnp.maximum(h2, 0.0)                  # relu(l2(x))
    out = jnp.dot(h2.astype(cdt), w3_ref[...],
                  preferred_element_type=jnp.float32) + b3_ref[...]
    o_ref[...] = out.astype(o_ref.dtype)       # l3(x), stored at natural width


def pad_params(params, compute_dtype=jnp.float32):
    """Pad only the hidden dim to 128 lanes, once, outside the hot path.

    Input / output feature dims keep their natural width.  Padded hidden lanes
    are zero -> stay exactly zero through bias add + ReLU -> exact results.
    """
    in_size, hidden = params["w1"].shape
    hp = _round_up(hidden, LANE)
    dh = hp - hidden
    return {
        "w1": jnp.pad(params["w1"], ((0, 0), (0, dh))).astype(compute_dtype),
        "b1": jnp.pad(params["b1"], ((0, 0), (0, dh))).astype(jnp.float32),
        "w2": jnp.pad(params["w2"], ((0, dh), (0, dh))).astype(compute_dtype),
        "b2": jnp.pad(params["b2"], ((0, 0), (0, dh))).astype(jnp.float32),
        "w3": jnp.pad(params["w3"], ((0, dh), (0, 0))).astype(compute_dtype),
        "b3": params["b3"].astype(jnp.float32),
    }


@functools.partial(jax.jit, static_argnames=("tile_m",))
def brain_forward(x, padded_params, *, tile_m=1024):
    """x: (batch, input_size). padded_params: output of pad_params()."""
    batch, in_size = x.shape
    w1, b1 = padded_params["w1"], padded_params["b1"]
    w2, b2 = padded_params["w2"], padded_params["b2"]
    w3, b3 = padded_params["w3"], padded_params["b3"]
    hid = w1.shape[1]
    out_size = w3.shape[1]

    # Batch tiling: tm forced to a multiple of 8; batch rounded only to the
    # sublane granularity (not to a whole tile); grid handles the ragged tail.
    tile_m = max(SUBLANE, (int(tile_m) // SUBLANE) * SUBLANE)
    batch_pad = _round_up(batch, SUBLANE)
    tm = min(tile_m, batch_pad)
    grid_n = pl.cdiv(batch_pad, tm)
    # v7x: prefer >=2 tiles for large batches so "parallel" balances across
    # both TensorCores (no-op cost on single-TC v5e/v6e).
    if grid_n == 1 and batch_pad >= 256:
        tm = _round_up(pl.cdiv(batch_pad, 2), SUBLANE)
        grid_n = pl.cdiv(batch_pad, tm)

    x_p = x if batch_pad == batch else jnp.pad(x, ((0, batch_pad - batch), (0, 0)))

    act_in_spec = pl.BlockSpec((tm, in_size), lambda i: (i, 0))    # (tm, 9) reads
    out_spec = pl.BlockSpec((tm, out_size), lambda i: (i, 0))      # (tm, 9) stores
    w1_spec = pl.BlockSpec((in_size, hid), lambda i: (0, 0))       # VMEM-resident
    w2_spec = pl.BlockSpec((hid, hid), lambda i: (0, 0))
    w3_spec = pl.BlockSpec((hid, out_size), lambda i: (0, 0))
    b12_spec = pl.BlockSpec((1, hid), lambda i: (0, 0))
    b3_spec = pl.BlockSpec((1, out_size), lambda i: (0, 0))

    w_item = jnp.dtype(w1.dtype).itemsize
    flops = 2 * batch_pad * (in_size * hid + hid * hid + hid * out_size)
    bytes_accessed = (batch_pad * in_size * jnp.dtype(x_p.dtype).itemsize   # x in
                      + batch_pad * out_size * 4                            # out
                      + (in_size * hid + hid * hid + hid * out_size) * w_item
                      + (2 * hid + out_size) * 4)                           # biases

    out = pl.pallas_call(
        brain_kernel,
        out_shape=jax.ShapeDtypeStruct((batch_pad, out_size), jnp.float32),
        grid_spec=pltpu.PrefetchScalarGridSpec(
            num_scalar_prefetch=0,
            grid=(grid_n,),
            in_specs=[act_in_spec, w1_spec, b12_spec, w2_spec, b12_spec,
                      w3_spec, b3_spec],
            out_specs=out_spec,
        ),
        compiler_params=pltpu.CompilerParams(
            dimension_semantics=("parallel",),   # shard batch tiles across TCs
        ),
        cost_estimate=pl.CostEstimate(
            flops=flops, transcendentals=0, bytes_accessed=bytes_accessed),
    )(x_p, w1, b1, w2, b2, w3, b3)

    # Only the (<=7 row) sublane padding is stripped; no lane slicing needed.
    return out if batch_pad == batch else out[:batch]


def init_params(key, input_size, hidden_size, output_size):
    """Init mimicking nn.Linear's U(-1/sqrt(fan_in), 1/sqrt(fan_in)).

    Weights stored transposed relative to PyTorch: (in_features, out_features).
    """
    ks = jax.random.split(key, 6)

    def uniform(k, shape, fan_in):
        bound = 1.0 / jnp.sqrt(jnp.float32(fan_in))
        return jax.random.uniform(k, shape, jnp.float32, -bound, bound)

    return {
        "w1": uniform(ks[0], (input_size, hidden_size), input_size),
        "b1": uniform(ks[1], (1, hidden_size), input_size),
        "w2": uniform(ks[2], (hidden_size, hidden_size), hidden_size),
        "b2": uniform(ks[3], (1, hidden_size), hidden_size),
        "w3": uniform(ks[4], (hidden_size, output_size), hidden_size),
        "b3": uniform(ks[5], (1, output_size), hidden_size),
    }


def brain_reference(x, params):
    h1 = jnp.maximum(x @ params["w1"] + params["b1"], 0.0)
    h2 = jnp.maximum(h1 @ params["w2"] + params["b2"], 0.0)
    return h2 @ params["w3"] + params["b3"]


if __name__ == "__main__":
    # Tic-tac-toe sized Brain: 9 board cells -> hidden 32 -> 9 action values.
    input_size, hidden_size, output_size = 9, 32, 9

    key = jax.random.PRNGKey(0)
    k_params, k_x1, k_x2 = jax.random.split(key, 3)
    params = init_params(k_params, input_size, hidden_size, output_size)
    padded_f32 = pad_params(params)                     # pad once, outside hot path

    # Small deployment-like batch (single tile, exact f32 parity).
    x_small = jax.random.normal(k_x1, (8, input_size), jnp.float32)
    out_small = jax.block_until_ready(brain_forward(x_small, padded_f32))
    ref_small = brain_reference(x_small, params)
    assert out_small.shape == (8, output_size), out_small.shape
    assert jnp.allclose(out_small, ref_small, atol=1e-5, rtol=1e-5), "mismatch (batch=8)"

    # Ragged batch: exercises multi-tile grid + partial boundary block.
    x_big = jax.random.normal(k_x2, (300, input_size), jnp.float32)
    out_big = jax.block_until_ready(brain_forward(x_big, padded_f32, tile_m=128))
    ref_big = brain_reference(x_big, params)
    assert out_big.shape == (300, output_size), out_big.shape
    assert jnp.allclose(out_big, ref_big, atol=1e-5, rtol=1e-5), "mismatch (batch=300)"

    # bf16 weight path (native MXU dtype on v6e/v7x); accumulation stays f32.
    padded_bf16 = pad_params(params, compute_dtype=jnp.bfloat16)
    out_bf16 = jax.block_until_ready(brain_forward(x_big, padded_bf16, tile_m=128))
    assert out_bf16.shape == (300, output_size), out_bf16.shape
    assert jnp.allclose(out_bf16, ref_big, atol=1e-1, rtol=1e-1), "mismatch (bf16)"

    print("KERNEL_OK")
</pallas_src>

<mosaic_0001>
module attributes {stable_mosaic.version = 11 : i64} {
  func.func @brain_kernel(%arg0: i32, %arg1: memref<8x9xf32, #tpu.memory_space<vmem>>, %arg2: memref<9x128xf32, #tpu.memory_space<vmem>>, %arg3: memref<1x128xf32, #tpu.memory_space<vmem>>, %arg4: memref<128x128xf32, #tpu.memory_space<vmem>>, %arg5: memref<1x128xf32, #tpu.memory_space<vmem>>, %arg6: memref<128x9xf32, #tpu.memory_space<vmem>>, %arg7: memref<1x9xf32, #tpu.memory_space<vmem>>, %arg8: memref<8x9xf32, #tpu.memory_space<vmem>>) attributes {dimension_semantics = [#tpu.dimension_semantics<parallel>], iteration_bounds = array<i64: 1>, scalar_prefetch = 0 : i64, scratch_operands = 0 : i64, tpu.core_type = #tpu.core_type<tc>, window_params = [{transform_indices = @transform_0, window_bounds = array<i64: 8, 9>}, {pipeline_mode = #tpu.pipeline_mode<synchronous>, transform_indices = @transform_1, window_bounds = array<i64: 9, 128>}, {pipeline_mode = #tpu.pipeline_mode<synchronous>, transform_indices = @transform_2, window_bounds = array<i64: 1, 128>}, {pipeline_mode = #tpu.pipeline_mode<synchronous>, transform_indices = @transform_3, window_bounds = array<i64: 128, 128>}, {pipeline_mode = #tpu.pipeline_mode<synchronous>, transform_indices = @transform_4, window_bounds = array<i64: 1, 128>}, {pipeline_mode = #tpu.pipeline_mode<synchronous>, transform_indices = @transform_5, window_bounds = array<i64: 128, 9>}, {pipeline_mode = #tpu.pipeline_mode<synchronous>, transform_indices = @transform_6, window_bounds = array<i64: 1, 9>}, {transform_indices = @transform_7, window_bounds = array<i64: 8, 9>}]} {
    %c0 = arith.constant 0 : index
    %c0_0 = arith.constant 0 : index
    %0 = vector.load %arg1[%c0, %c0_0] : memref<8x9xf32, #tpu.memory_space<vmem>>, vector<8x9xf32>
    %c0_1 = arith.constant 0 : index
    %c0_2 = arith.constant 0 : index
    %1 = vector.load %arg2[%c0_1, %c0_2] : memref<9x128xf32, #tpu.memory_space<vmem>>, vector<9x128xf32>
    %cst = arith.constant dense<0.000000e+00> : vector<8x128xf32>
    %2 = tpu.matmul %0, %1, %cst {dimension_numbers = #tpu.dot_dimension_numbers<[1], [0], [0], [1], [0, 0, 1, 1], [], []>} : vector<8x9xf32>, vector<9x128xf32>, vector<8x128xf32> -> vector<8x128xf32>
    %c0_3 = arith.constant 0 : index
    %c0_4 = arith.constant 0 : index
    %3 = vector.load %arg3[%c0_3, %c0_4] : memref<1x128xf32, #tpu.memory_space<vmem>>, vector<1x128xf32>
    %4 = vector.broadcast %3 : vector<1x128xf32> to vector<8x128xf32>
    %5 = arith.addf %2, %4 : vector<8x128xf32>
    %cst_5 = arith.constant 0.000000e+00 : f32
    %6 = vector.broadcast %cst_5 : f32 to vector<8x128xf32>
    %7 = arith.maximumf %5, %6 : vector<8x128xf32>
    %c0_6 = arith.constant 0 : index
    %c0_7 = arith.constant 0 : index
    %8 = vector.load %arg4[%c0_6, %c0_7] : memref<128x128xf32, #tpu.memory_space<vmem>>, vector<128x128xf32>
    %cst_8 = arith.constant dense<0.000000e+00> : vector<8x128xf32>
    %9 = tpu.matmul %7, %8, %cst_8 {dimension_numbers = #tpu.dot_dimension_numbers<[1], [0], [0], [1], [0, 0, 1, 1], [], []>} : vector<8x128xf32>, vector<128x128xf32>, vector<8x128xf32> -> vector<8x128xf32>
    %c0_9 = arith.constant 0 : index
    %c0_10 = arith.constant 0 : index
    %10 = vector.load %arg5[%c0_9, %c0_10] : memref<1x128xf32, #tpu.memory_space<vmem>>, vector<1x128xf32>
    %11 = vector.broadcast %10 : vector<1x128xf32> to vector<8x128xf32>
    %12 = arith.addf %9, %11 : vector<8x128xf32>
    %cst_11 = arith.constant 0.000000e+00 : f32
    %13 = vector.broadcast %cst_11 : f32 to vector<8x128xf32>
    %14 = arith.maximumf %12, %13 : vector<8x128xf32>
    %c0_12 = arith.constant 0 : index
    %c0_13 = arith.constant 0 : index
    %15 = vector.load %arg6[%c0_12, %c0_13] : memref<128x9xf32, #tpu.memory_space<vmem>>, vector<128x9xf32>
    %cst_14 = arith.constant dense<0.000000e+00> : vector<8x9xf32>
    %16 = tpu.matmul %14, %15, %cst_14 {dimension_numbers = #tpu.dot_dimension_numbers<[1], [0], [0], [1], [0, 0, 1, 1], [], []>} : vector<8x128xf32>, vector<128x9xf32>, vector<8x9xf32> -> vector<8x9xf32>
    %c0_15 = arith.constant 0 : index
    %c0_16 = arith.constant 0 : index
    %17 = vector.load %arg7[%c0_15, %c0_16] : memref<1x9xf32, #tpu.memory_space<vmem>>, vector<1x9xf32>
    %18 = vector.broadcast %17 : vector<1x9xf32> to vector<8x9xf32>
    %19 = arith.addf %16, %18 : vector<8x9xf32>
    %c0_17 = arith.constant 0 : index
    %c0_18 = arith.constant 0 : index
    %20 = vector.load %arg8[%c0_17, %c0_18] : memref<8x9xf32, #tpu.memory_space<vmem>>, vector<8x9xf32>
    tpu.vector_store %arg8[%c0_17, %c0_18], %19 {strides = array<i32>} : memref<8x9xf32, #tpu.memory_space<vmem>>, vector<8x9xf32>,
    return
  }
  func.func @transform_0(%arg0: i32) -> (i32, i32) {
    %c0_i32 = arith.constant 0 : i32
    %c0_i32_0 = arith.constant 0 : i32
    return %arg0, %c0_i32 : i32, i32
  }
  func.func @transform_1(%arg0: i32) -> (i32, i32) {
    %c0_i32 = arith.constant 0 : i32
    %c0_i32_0 = arith.constant 0 : i32
    %c0_i32_1 = arith.constant 0 : i32
    return %c0_i32, %c0_i32_0 : i32, i32
  }
  func.func @transform_2(%arg0: i32) -> (i32, i32) {
    %c0_i32 = arith.constant 0 : i32
    %c0_i32_0 = arith.constant 0 : i32
    %c0_i32_1 = arith.constant 0 : i32
    return %c0_i32, %c0_i32_0 : i32, i32
  }
  func.func @transform_3(%arg0: i32) -> (i32, i32) {
    %c0_i32 = arith.constant 0 : i32
    %c0_i32_0 = arith.constant 0 : i32
    %c0_i32_1 = arith.constant 0 : i32
    return %c0_i32, %c0_i32_0 : i32, i32
  }
  func.func @transform_4(%arg0: i32) -> (i32, i32) {
    %c0_i32 = arith.constant 0 : i32
    %c0_i32_0 = arith.constant 0 : i32
    %c0_i32_1 = arith.constant 0 : i32
    return %c0_i32, %c0_i32_0 : i32, i32
  }
  func.func @transform_5(%arg0: i32) -> (i32, i32) {
    %c0_i32 = arith.constant 0 : i32
    %c0_i32_0 = arith.constant 0 : i32
    %c0_i32_1 = arith.constant 0 : i32
    return %c0_i32, %c0_i32_0 : i32, i32
  }
  func.func @transform_6(%arg0: i32) -> (i32, i32) {
    %c0_i32 = arith.constant 0 : i32
    %c0_i32_0 = arith.constant 0 : i32
    %c0_i32_1 = arith.constant 0 : i32
    return %c0_i32, %c0_i32_0 : i32, i32
  }
  func.func @transform_7(%arg0: i32) -> (i32, i32) {
    %c0_i32 = arith.constant 0 : i32
    %c0_i32_0 = arith.constant 0 : i32
    return %arg0, %c0_i32 : i32, i32
  }
}

</mosaic_0001>

<bundles_post_ra>
// kernel: brain_forward.1
= control target key start
LH: loop header
LB: loop body
LE: loop exit
PB: predicated region body
PF: predicated region fallthrough
CT: control target
= control target key end

     0   :  { %12 = vsyncpa [#allocation3], 0  ;;  %s759_s0 = inlined_call_operand.hbm [shape: f32[8,9], index: 0, kind: input, shape index: {}]   ;;  %s760_s1 = inlined_call_operand.vmem [shape: f32[9,128], index: 1, kind: input, shape index: {}]   ;;  %s761_s2 = inlined_call_operand.vmem [shape: f32[1,128], index: 2, kind: input, shape index: {}]   ;;  %s762_s3 = inlined_call_operand.vmem [shape: f32[128,128], index: 3, kind: input, shape index: {}]   ;;  %s763_s4 = inlined_call_operand.vmem [shape: f32[1,128], index: 4, kind: input, shape index: {}]   ;;  %s764_s5 = inlined_call_operand.vmem [shape: f32[128,9], index: 5, kind: input, shape index: {}]   ;;  %s765_s6 = inlined_call_operand.vmem [shape: f32[1,9], index: 6, kind: input, shape index: {}]   ;;  %s766_s7 = inlined_call_operand.hbm [shape: f32[8,9], index: 7, kind: output, shape index: {}]  }
   0x1   :  { %13 = vsyncpa [#allocation4], 0  ;;  %s556_s24 = smov [#allocation2]   ;;  %s508_s28 = scalar_lea.hbm %s759_s0, 128 }
   0x2   :  { %s20_s25 = sshll.u32 %s556_s24, 4  ;;  %p509_p0 = scmp.ne.s32.totalorder %s759_s0, %s508_s28  ;;  %s21_s25 = int_to_ptr.vmem [resolvable:$true] %s20_s25 }
   0x3   :  { %p512_p1 = scmp.lt.u32.totalorder %s508_s28, %s759_s0 }
   0x5   :  { %p514_p2 = pnand %p512_p1, %p509_p0 }
   0x7   :  { %517 = shalt.err (!%p514_p2)
}
   0x8   :  { %s518_s10 = scalar_lea.vmem %s21_s25, 128  ;;  %p523_p4 = scmp.lt.s32.totalorder %s21_s25, %s21_s25 }
   0x9   :  { %p519_p3 = scmp.ne.s32.totalorder %s21_s25, %s518_s10  ;;  %p524_p5 = scmp.lt.s32.totalorder %s518_s10, %s518_s10 }
   0xb   :  { %p525_p6 = por %p524_p5, %p523_p4 }
   0xd   :  { %p526_p7 = pnand %p525_p6, %p519_p3 }
   0xf   :  { %529 = shalt.err (!%p526_p7)
}
  0x10   :  { %23 = dma.hbm_to_vmem [thread:$0]  %s759_s0, 128, %s21_s25, [#allocation3]  }
  0x11   :  { %552 = dma.done.wait [#allocation3], 128  }
  0x12   :  { %553 = vsyncadd [#allocation3], 4294967168  ;;  %v557_v0 = vmov 0.0|0.0   ;;  %vm558_vm0 = vmmov 0   ;;  %v559_v1 = vmov 0.0   ;;  %vm53_vm1 = vcmask 1040384  }
  0x13   :  { %450 = vmatprep.subr.bf16.mxu0 %v557_v0  ;;  %454 = vmatprep.subr.bf16.mxu1 %v557_v0  ;;  %v40_v2 = vld [vmem:[%s760_s1] sm:$0xff]  ;;  %v41_v3 = vld [vmem:[%s760_s1 + $0x8] sm:$0x1]  ;;  %vm560_vm2 = vmmov 1   ;;  %v130_v7 = vld [vmem:[%s762_s3 + $0x10] sm:$0xff]  ;;  %vm49_vm4 = vcmask 72704  }
  0x14   :  { %377 = vmatprep.mubr.msk.f32.mxu0 %vm558_vm0, %v559_v1  ;;  %412 = vmatprep.mubr.msk.f32.mxu1 %vm558_vm0, %v559_v1  ;;  %vm452_vm3 = vmpackc.low %vm53_vm1, %vm560_vm2  ;;  %v451_v4 = vpack.c.bf16 %v41_v3, %v40_v2  ;;  %v128_v5 = vld [vmem:[%s762_s3] sm:$0xff]  ;;  %v129_v6 = vld [vmem:[%s762_s3 + $0x8] sm:$0xff]  ;;  %s561_s9 = smov [#allocation5]  }
  0x15   :  { %v455_v8 = vpack.c.bf16 %v129_v6, %v128_v5  ;;  %v131_v9 = vld [vmem:[%s762_s3 + $0x18] sm:$0xff]  ;;  %v39_v10 = vld [vmem:[#allocation2] sm:$0xff]  ;;  %v133_v13 = vld [vmem:[%s762_s3 + $0x28] sm:$0xff]  ;;  %s322_s10 = sshll.u32 %s561_s9, 4  ;;  %s323_s10 = int_to_ptr.vmem [resolvable:$true] %s322_s10 }
  0x16   :  { %453 = vmatpush3.bf16.msk.msra.mxu0 %vm452_vm3, %v451_v4  ;;  %v458_v11 = vpack.c.bf16 %v131_v9, %v130_v7  ;;  %v132_v12 = vld [vmem:[%s762_s3 + $0x20] sm:$0xff]  ;;  %v134_v15 = vld [vmem:[%s762_s3 + $0x30] sm:$0xff]  ;;  %v135_v16 = vld [vmem:[%s762_s3 + $0x38] sm:$0xff]  ;;  %p535_p9 = scmp.lt.s32.totalorder %s323_s10, %s323_s10 }
  0x17   :  { %456 = vmatpush3.bf16.msra.mxu1 %v455_v8  ;;  %478 = vmatprep.subr.bf16.mxu0 %v557_v0  ;;  %v461_v14 = vpack.c.bf16 %v133_v13, %v132_v12  ;;  %v464_v17 = vpack.c.bf16 %v135_v16, %v134_v15  ;;  %v136_v18 = vld [vmem:[%s762_s3 + $0x40] sm:$0xff]  ;;  %v137_v19 = vld [vmem:[%s762_s3 + $0x48] sm:$0xff]  ;;  %v138_v21 = vld [vmem:[%s762_s3 + $0x50] sm:$0xff] }
  0x18   :  { %457 = vmatprep.subr.bf16.mxu1 %v557_v0  ;;  %v467_v20 = vpack.c.bf16 %v137_v19, %v136_v18  ;;  %v139_v22 = vld [vmem:[%s762_s3 + $0x58] sm:$0xff]  ;;  %v140_v24 = vld [vmem:[%s762_s3 + $0x60] sm:$0xff]  ;;  %v141_v25 = vld [vmem:[%s762_s3 + $0x68] sm:$0xff] }
  0x19   :  { %378 = vmatmul.mubr.msk.f32.vlgmr.msra.gmra.mrb[0].mxu0 %vm49_vm4, %v39_v10  ;;  %v470_v23 = vpack.c.bf16 %v139_v22, %v138_v21  ;;  %v473_v26 = vpack.c.bf16 %v141_v25, %v140_v24  ;;  %v142_v27 = vld [vmem:[%s762_s3 + $0x70] sm:$0xff]  ;;  %v143_v28 = vld [vmem:[%s762_s3 + $0x78] sm:$0xff]  ;;  %v222_v30 = vld [vmem:[%s764_s5] sm:$0xff] }
  0x1a   :  { %447 = vmatprep.mubr.msk.f32.mxu0 %vm558_vm0, %v559_v1  ;;  %v476_v29 = vpack.c.bf16 %v143_v28, %v142_v27  ;;  %v223_v31 = vld [vmem:[%s764_s5 + $0x8] sm:$0xff]  ;;  %v224_v32 = vld [vmem:[%s764_s5 + $0x10] sm:$0xff]  ;;  %v225_v34 = vld [vmem:[%s764_s5 + $0x18] sm:$0xff] }
  0x1b   :  { %459 = vmatpush3.bf16.msra.mxu1 %v458_v11  ;;  %v479_v33 = vpack.c.bf16 %v223_v31, %v222_v30  ;;  %v482_v35 = vpack.c.bf16 %v225_v34, %v224_v32  ;;  %v226_v36 = vld [vmem:[%s764_s5 + $0x20] sm:$0xff]  ;;  %v227_v37 = vld [vmem:[%s764_s5 + $0x28] sm:$0xff]  ;;  %v228_v39 = vld [vmem:[%s764_s5 + $0x30] sm:$0xff] }
  0x1c   :  { %460 = vmatprep.subr.bf16.mxu1 %v557_v0  ;;  %v485_v38 = vpack.c.bf16 %v227_v37, %v226_v36  ;;  %v229_v40 = vld [vmem:[%s764_s5 + $0x38] sm:$0xff]  ;;  %v230_v42 = vld [vmem:[%s764_s5 + $0x40] sm:$0xff]  ;;  %v231_v43 = vld [vmem:[%s764_s5 + $0x48] sm:$0xff] }
  0x1d   :  { %480 = vmatpush3.bf16.msra.mxu0 %v479_v33  ;;  %v488_v41 = vpack.c.bf16 %v229_v40, %v228_v39  ;;  %v491_v44 = vpack.c.bf16 %v231_v43, %v230_v42  ;;  %v232_v45 = vld [vmem:[%s764_s5 + $0x50] sm:$0xff]  ;;  %v233_v46 = vld [vmem:[%s764_s5 + $0x58] sm:$0xff]  ;;  %v234_v48 = vld [vmem:[%s764_s5 + $0x60] sm:$0xff] }
  0x1e   :  { %481 = vmatprep.subr.bf16.mxu0 %v557_v0  ;;  %v494_v47 = vpack.c.bf16 %v233_v46, %v232_v45  ;;  %v235_v49 = vld [vmem:[%s764_s5 + $0x68] sm:$0xff]  ;;  %v331_v51 = vld [vmem:[%s761_s2] ss:$0 sm:$0xff]  ;;  %v236_v56 = vld [vmem:[%s764_s5 + $0x70] sm:$0xff] }
  0x1f   :  { %462 = vmatpush3.bf16.msra.mxu1 %v461_v14  ;;  %v497_v50 = vpack.c.bf16 %v235_v49, %v234_v48  ;;  %v237_v57 = vld [vmem:[%s764_s5 + $0x78] sm:$0xff]  ;;  %v334_v59 = vld [vmem:[%s763_s4] ss:$0 sm:$0xff]  ;;  %s530_s5 = scalar_lea.vmem %s323_s10, 128 }
  0x20   :  { %463 = vmatprep.subr.bf16.mxu1 %v557_v0  ;;  %v500_v58 = vpack.c.bf16 %v237_v57, %v236_v56  ;;  %p531_p8 = scmp.ne.s32.totalorder %s323_s10, %s530_s5  ;;  %p536_p10 = scmp.lt.s32.totalorder %s530_s5, %s530_s5 }
  0x21   :  { %483 = vmatpush3.bf16.msra.mxu0 %v482_v35 }
  0x22   :  { %484 = vmatprep.subr.bf16.mxu0 %v557_v0  ;;  %p537_p11 = por %p536_p10, %p535_p9 }
  0x23   :  { %465 = vmatpush3.bf16.msra.mxu1 %v464_v17 }
  0x24   :  { %466 = vmatprep.subr.bf16.mxu1 %v557_v0  ;;  %p538_p12 = pnand %p537_p11, %p531_p8 }
  0x25   :  { %486 = vmatpush3.bf16.msra.mxu0 %v485_v38 }
  0x26   :  { %487 = vmatprep.subr.bf16.mxu0 %v557_v0 }
  0x27   :  { %468 = vmatpush3.bf16.msra.mxu1 %v467_v20 }
  0x28   :  { %469 = vmatprep.subr.bf16.mxu1 %v557_v0 }
  0x29   :  { %489 = vmatpush3.bf16.msra.mxu0 %v488_v41 }
  0x2a   :  { %490 = vmatprep.subr.bf16.mxu0 %v557_v0 }
  0x2b   :  { %471 = vmatpush3.bf16.msra.mxu1 %v470_v23 }
  0x2c   :  { %472 = vmatprep.subr.bf16.mxu1 %v557_v0 }
  0x2d   :  { %492 = vmatpush3.bf16.msra.mxu0 %v491_v44 }
  0x2e   :  { %493 = vmatprep.subr.bf16.mxu0 %v557_v0 }
  0x2f   :  { %474 = vmatpush3.bf16.msra.mxu1 %v473_v26 }
  0x30   :  { %475 = vmatprep.subr.bf16.mxu1 %v557_v0 }
  0x31   :  { %495 = vmatpush3.bf16.msra.mxu0 %v494_v47 }
  0x32   :  { %496 = vmatprep.subr.bf16.mxu0 %v557_v0 }
  0x33   :  { %477 = vmatpush3.bf16.msra.mxu1 %v476_v29 }
  0x35   :  { %498 = vmatpush3.bf16.msra.mxu0 %v497_v50 }
  0x36   :  { %499 = vmatprep.subr.bf16.mxu0 %v557_v0  ;;  %v335_v0 = vld [vmem:[%s765_s6] ss:$0 sm:$0xff] }
  0x39   :  { %501 = vmatpush3.bf16.msra.mxu0 %v500_v58 }
  0xec   :  { %v123_v52 = vpop.f32.mrb[0].mxu0 }
  0xed   :  { %v124_v53 = vadd.f32 %v331_v51, %v123_v52  ;;  %v379_v54 = vpop.f32.mrb[1].mxu0 }
  0xef   :  { %v127_v55 = vmax.f32 %v124_v53, 0.0 }
  0xf1   :  { %413 = vmatmul.mubr.f32.vlgmr.msra.gmra.mrb[0].mxu1 %v127_v55 }
 0x1c4   :  { %v217_v60 = vpop.f32.mrb[0].mxu1 }
 0x1c5   :  { %v218_v61 = vadd.f32 %v334_v59, %v217_v60  ;;  %v414_v62 = vpop.f32.mrb[1].mxu1 }
 0x1c7   :  { %v221_v63 = vmax.f32 %v218_v61, 0.0 }
 0x1c9   :  { %448 = vmatmul.mubr.f32.vlgmr.msra.gmra.mrb[2].mxu0 %v221_v63 }
 0x29c   :  { %v311_v1 = vpop.f32.mrb[2].mxu0 }
 0x29d   :  { %v312_v2 = vadd.f32 %v335_v0, %v311_v1  ;;  %v449_v3 = vpop.f32.mrb[3].mxu0 }
 0x29f   :  { %315 = vst.msk [vmem:[#allocation5] sm:$0xff] %vm49_vm4, %v312_v2 }
 0x2a0   :  { %541 = shalt.err (!%p538_p12)
}
 0x2a1   :  { %s542_s12 = scalar_lea.hbm %s766_s7, 128 }
 0x2a2   :  { %p543_p13 = scmp.ne.s32.totalorder %s766_s7, %s542_s12  ;;  %p546_p0 = scmp.lt.u32.totalorder %s542_s12, %s766_s7 }
 0x2a4   :  { %p548_p1 = pnand %p546_p0, %p543_p13 }
 0x2a6   :  { %551 = shalt.err (!%p548_p1)
}
 0x2a7   :  { %325 = dma.vmem_to_hbm [thread:$0]  %s323_s10, 128, %s766_s7, [#allocation4]  }
 0x2a8   :  { %554 = dma.done.wait [#allocation4], 128  }
 0x2a9   :  { %555 = vsyncadd [#allocation4], 4294967168 }
 0x2aa   :  { %329 = vsyncpa [#allocation3], 1 }
 0x2ab   :  { %330 = vsyncpa [#allocation4], 1 }

</bundles_post_ra>
